<compile_context>
chip_gen: v5e
topology: v5e:2x2
jax: 0.10.0
libtpu: 0.0.40
codegen_flags: <defaults>
</compile_context>

<pallas_src>
import functools

import jax
import jax.numpy as jnp
from jax import lax
from jax.experimental import pallas as pl
from jax.experimental.pallas import tpu as pltpu


def _round_up(x, m):
    return (x + m - 1) // m * m


def _cdiv(a, b):
    return (a + b - 1) // b


def _physical_vmem_bytes():
    """Per-core physical VMEM (v5e/v6e: 128 MiB, v7x: 64 MiB per TC)."""
    try:
        return int(pltpu.get_tpu_info().vmem_capacity_bytes)
    except Exception:
        return 64 << 20  # conservative fallback (v7x per-TC)


def _choose_tm(M, block_rows):
    """Balanced row tile: avoids up-to-a-full-tile of dead padded rows, keeps
    tm 128-aligned when large (clean MXU passes, unmasked stores) and
    16-aligned otherwise (bf16 sublane packing)."""
    n_tiles = max(1, _cdiv(M, block_rows))
    tm = _cdiv(M, n_tiles)
    align = 128 if tm >= 128 else 16
    return _round_up(tm, align)


# ---------------------------------------------------------------------------
# Kernels
# ---------------------------------------------------------------------------

def _layernorm_f32(hf, g_ref, be_ref, eps, out_dtype):
    """PyTorch-semantics LayerNorm on an f32 input: unbiased std, (std+eps)."""
    d = hf.shape[-1]
    mean = jnp.mean(hf, axis=-1, keepdims=True)
    centered = hf - mean
    var_unbiased = jnp.sum(centered * centered, axis=-1, keepdims=True) / (d - 1)
    std = jnp.sqrt(var_unbiased)
    inv = pl.reciprocal(std + eps, approx=False)   # exact: runs off the hot path
    out = (g_ref[...].astype(jnp.float32) * (centered * inv)
           + be_ref[...].astype(jnp.float32))
    return out.astype(out_dtype)


def _encoder_resident_kernel(x_ref, w_ref, b_ref, g_ref, be_ref, o_ref, h_ref,
                             *, eps: float, n_layers: int):
    """1-D grid over row tiles; whole weight stack resident in VMEM.

    x_ref:  [TM, D]     input rows
    w_ref:  [N, D, D]   weight stack (bf16, constant block index -> DMA'd once)
    b_ref:  [N, 1, D]   biases (f32)
    g_ref/be_ref: [1, D] final LayerNorm params
    o_ref:  [TM, D]     output rows
    h_ref:  [TM, D]     bf16 VMEM carry (half the footprint of an f32 carry)
    """
    h_ref[...] = x_ref[...].astype(h_ref.dtype)

    def body(l, carry):
        acc = jnp.dot(h_ref[...], w_ref[l], preferred_element_type=jnp.float32)
        h_ref[...] = (acc + b_ref[l].astype(jnp.float32)).astype(h_ref.dtype)
        return carry

    # All but the last layer; the last layer's f32 accumulator feeds the
    # LayerNorm directly so the LN input never round-trips through bf16.
    lax.fori_loop(0, n_layers - 1, body, 0, unroll=bool(n_layers <= 8))

    last = n_layers - 1
    acc = jnp.dot(h_ref[...], w_ref[last], preferred_element_type=jnp.float32)
    hf = acc + b_ref[last].astype(jnp.float32)
    o_ref[...] = _layernorm_f32(hf, g_ref, be_ref, eps, o_ref.dtype)


def _encoder_streamed_kernel(x_ref, w_ref, b_ref, g_ref, be_ref, o_ref, h_ref,
                             *, eps: float):
    """Fallback for weight stacks too large to keep resident:
    2-D (row-tile, layer) grid, one (D, D) weight streamed per layer step.

    NOTE: the bf16 activation carry in h_ref is only correct because the layer
    grid axis (axis 1) is the innermost, sequentially iterated ("arbitrary")
    dimension.  Do NOT reorder the grid or mark that axis parallel.
    """
    l = pl.program_id(1)
    n_layers = pl.num_programs(1)

    @pl.when(l == 0)
    def _():
        h_ref[...] = x_ref[...].astype(h_ref.dtype)

    acc = jnp.dot(h_ref[...], w_ref[0], preferred_element_type=jnp.float32)
    hf = acc + b_ref[0].astype(jnp.float32)        # f32, used by LN on last step
    h_ref[...] = hf.astype(h_ref.dtype)

    @pl.when(l == n_layers - 1)
    def _():
        o_ref[...] = _layernorm_f32(hf, g_ref, be_ref, eps, o_ref.dtype)


# ---------------------------------------------------------------------------
# Wrapper
# ---------------------------------------------------------------------------

def encoder_forward(x, weights, biases, gamma, beta, *, eps=1e-6,
                    block_rows=1024, mxu_dtype=jnp.bfloat16):
    """x: [B, S, D]; weights: [N, D, D]; biases: [N, D]; gamma/beta: [D].

    Returns [B, S, D].

    NOTE: with the default mxu_dtype=bf16 the matmul operands are bf16
    (f32 MXU accumulation), so results differ slightly from a pure-float32
    reference; pass mxu_dtype=jnp.float32 for bit-closer math.
    """
    B, S, D = x.shape
    N = int(weights.shape[0])
    M = B * S

    w_itemsize = jnp.dtype(mxu_dtype).itemsize
    x_itemsize = jnp.dtype(x.dtype).itemsize

    # ---- Hardware-aware VMEM budget ---------------------------------------
    phys_vmem = _physical_vmem_bytes()
    # Leave headroom for compiler-internal scratch / semaphores:
    # ~48 MiB usable on v7x (64 MiB / TC), ~100 MiB on v5e/v6e (128 MiB).
    vmem_cap = int(min(phys_vmem - (16 << 20), 0.80 * phys_vmem))

    weight_stack_vmem = 2 * N * D * D * w_itemsize   # Pallas double-buffers inputs
    resident = weight_stack_vmem <= int(0.6 * vmem_cap)

    def tiles_vmem(tm_):
        # Double-buffered x + out tiles, bf16 carry scratch, f32 acc temporaries.
        return (2 * tm_ * D * x_itemsize + 2 * tm_ * D * x_itemsize
                + tm_ * D * w_itemsize + 2 * tm_ * D * 4)

    streamed_weight_vmem = 3 * (D * D * w_itemsize + D * 4)   # Buffered(3)
    fixed_vmem = weight_stack_vmem if resident else streamed_weight_vmem
    fixed_vmem += 2 * N * D * 4 + 4 * D * 4                   # biases, gamma/beta

    # ---- Row-tile selection -------------------------------------------------
    tm = _choose_tm(M, block_rows)
    while tm > 16 and fixed_vmem + tiles_vmem(tm) > vmem_cap:
        tm = max(16, _round_up(tm // 2, 16))

    m_pad = _round_up(M, tm)
    grid_m = m_pad // tm

    # ---- Operand prep -------------------------------------------------------
    x2 = x.reshape(M, D)
    if m_pad != M:
        x2 = jnp.pad(x2, ((0, m_pad - M), (0, 0)))
    w_mxu = weights.astype(mxu_dtype)                # halves weight DMA when bf16
    b2 = biases.reshape(N, 1, D).astype(jnp.float32)
    g2 = gamma.reshape(1, D)
    be2 = beta.reshape(1, D)

    vmem_limit = int(min(max(fixed_vmem + tiles_vmem(tm) + (4 << 20), 16 << 20),
                         vmem_cap))

    if resident:
        kernel = functools.partial(_encoder_resident_kernel, eps=eps, n_layers=N)
        cost = pl.CostEstimate(
            flops=2 * m_pad * D * D * N,
            transcendentals=2 * m_pad,
            bytes_accessed=(2 * m_pad * D * x_itemsize        # x in + out
                            + N * D * D * w_itemsize          # weights read once
                            + N * D * 4                       # biases
                            + 2 * D * 4),                     # gamma/beta
        )
        grid_spec = pltpu.PrefetchScalarGridSpec(
            num_scalar_prefetch=0,
            grid=(grid_m,),
            in_specs=[
                pl.BlockSpec((tm, D), lambda i: (i, 0)),       # x rows
                pl.BlockSpec((N, D, D), lambda i: (0, 0, 0)),  # resident weights
                pl.BlockSpec((N, 1, D), lambda i: (0, 0, 0)),  # biases
                pl.BlockSpec((1, D), lambda i: (0, 0)),        # LN gamma
                pl.BlockSpec((1, D), lambda i: (0, 0)),        # LN beta
            ],
            out_specs=pl.BlockSpec((tm, D), lambda i: (i, 0)),
            scratch_shapes=[pltpu.VMEM((tm, D), mxu_dtype)],   # bf16 carry
        )
        dim_sem = ("parallel",)
    else:
        # TODO(synk): for v7x with D >= ~4K, additionally tile the weight's
        # output-column axis so a single (D, D) block fits the 64 MiB VMEM.
        kernel = functools.partial(_encoder_streamed_kernel, eps=eps)
        cost = pl.CostEstimate(
            flops=2 * m_pad * D * D * N,
            transcendentals=2 * m_pad,
            bytes_accessed=(2 * m_pad * D * x_itemsize
                            + grid_m * N * D * D * w_itemsize  # re-read per tile
                            + grid_m * N * D * 4
                            + 2 * D * 4),
        )
        grid_spec = pltpu.PrefetchScalarGridSpec(
            num_scalar_prefetch=0,
            grid=(grid_m, N),                                  # (row tiles, layers)
            in_specs=[
                pl.BlockSpec((tm, D), lambda i, l: (i, 0)),
                pl.BlockSpec((1, D, D), lambda i, l: (l, 0, 0),
                             pipeline_mode=pl.Buffered(3)),    # deeper weight pipe
                pl.BlockSpec((1, 1, D), lambda i, l: (l, 0, 0)),
                pl.BlockSpec((1, D), lambda i, l: (0, 0)),
                pl.BlockSpec((1, D), lambda i, l: (0, 0)),
            ],
            out_specs=pl.BlockSpec((tm, D), lambda i, l: (i, 0)),
            scratch_shapes=[pltpu.VMEM((tm, D), mxu_dtype)],
        )
        dim_sem = ("parallel", "arbitrary")

    out = pl.pallas_call(
        kernel,
        out_shape=jax.ShapeDtypeStruct((m_pad, D), x.dtype),
        grid_spec=grid_spec,
        compiler_params=pltpu.CompilerParams(
            dimension_semantics=dim_sem,
            vmem_limit_bytes=vmem_limit,
        ),
        cost_estimate=cost,
    )(x2, w_mxu, b2, g2, be2)

    if m_pad != M:
        out = out[:M]
    return out.reshape(B, S, D)


def _reference(x, weights, biases, gamma, beta, eps=1e-6):
    """Plain-JAX f32 reference matching the PyTorch forward."""
    h = x.astype(jnp.float32)
    for l in range(weights.shape[0]):
        h = jnp.einsum("bsd,de->bse", h, weights[l],
                       precision=jax.lax.Precision.HIGHEST) + biases[l]
    mean = jnp.mean(h, axis=-1, keepdims=True)
    centered = h - mean
    var = jnp.sum(centered * centered, axis=-1, keepdims=True) / (h.shape[-1] - 1)
    std = jnp.sqrt(var)
    return gamma * centered / (std + eps) + beta


if __name__ == "__main__":
    # Lane-dense hidden size (multiple of 128); small B/S per the spec.
    B, S, D, N = 2, 8, 128, 2

    key = jax.random.PRNGKey(0)
    kx, kw, kb = jax.random.split(key, 3)

    x = jax.random.normal(kx, (B, S, D), dtype=jnp.float32)
    # Deterministic parameter init (synthetic, not a checkpoint).
    weights = jax.random.normal(kw, (N, D, D), dtype=jnp.float32) * 0.1
    biases = jax.random.normal(kb, (N, D), dtype=jnp.float32) * 0.01
    gamma = jnp.ones((D,), dtype=jnp.float32)   # LayerNorm a_2
    beta = jnp.zeros((D,), dtype=jnp.float32)   # LayerNorm b_2

    out = encoder_forward(x, weights, biases, gamma, beta)
    out = jax.block_until_ready(out)

    ref = _reference(x, weights, biases, gamma, beta)
    assert out.shape == (B, S, D)
    # bf16 MXU operands (f32 accumulation) => slightly looser tolerance vs the
    # pure-f32 reference; the LayerNorm itself now uses an exact reciprocal.
    assert jnp.allclose(out, ref, atol=2e-2, rtol=2e-2), "mismatch vs reference"

    print("KERNEL_OK")
</pallas_src>

<mosaic_0001>
module attributes {stable_mosaic.version = 11 : i64} {
  func.func @_encoder_resident_kernel(%arg0: i32, %arg1: memref<16x128xf32, #tpu.memory_space<vmem>>, %arg2: memref<2x128x128xbf16, #tpu.memory_space<vmem>>, %arg3: memref<2x1x128xf32, #tpu.memory_space<vmem>>, %arg4: memref<1x128xf32, #tpu.memory_space<vmem>>, %arg5: memref<1x128xf32, #tpu.memory_space<vmem>>, %arg6: memref<16x128xf32, #tpu.memory_space<vmem>>, %arg7: memref<16x128xbf16, #tpu.memory_space<vmem>>) attributes {dimension_semantics = [#tpu.dimension_semantics<parallel>], iteration_bounds = array<i64: 1>, scalar_prefetch = 0 : i64, scratch_operands = 1 : i64, tpu.core_type = #tpu.core_type<tc>, window_params = [{transform_indices = @transform_0, window_bounds = array<i64: 16, 128>}, {pipeline_mode = #tpu.pipeline_mode<synchronous>, transform_indices = @transform_1, window_bounds = array<i64: 2, 128, 128>}, {pipeline_mode = #tpu.pipeline_mode<synchronous>, transform_indices = @transform_2, window_bounds = array<i64: 2, 1, 128>}, {pipeline_mode = #tpu.pipeline_mode<synchronous>, transform_indices = @transform_3, window_bounds = array<i64: 1, 128>}, {pipeline_mode = #tpu.pipeline_mode<synchronous>, transform_indices = @transform_4, window_bounds = array<i64: 1, 128>}, {transform_indices = @transform_5, window_bounds = array<i64: 16, 128>}]} {
    %c0 = arith.constant 0 : index
    %c0_0 = arith.constant 0 : index
    %0 = vector.load %arg1[%c0, %c0_0] : memref<16x128xf32, #tpu.memory_space<vmem>>, vector<16x128xf32>
    %1 = arith.truncf %0 : vector<16x128xf32> to vector<16x128xbf16>
    %c0_1 = arith.constant 0 : index
    %c0_2 = arith.constant 0 : index
    %2 = vector.load %arg7[%c0_1, %c0_2] : memref<16x128xbf16, #tpu.memory_space<vmem>>, vector<16x128xbf16>
    tpu.vector_store %arg7[%c0_1, %c0_2], %1 {strides = array<i32>} : memref<16x128xbf16, #tpu.memory_space<vmem>>, vector<16x128xbf16>,
    %c0_i32 = arith.constant 0 : i32
    %c0_3 = arith.constant 0 : index
    %c0_4 = arith.constant 0 : index
    %3 = vector.load %arg7[%c0_3, %c0_4] : memref<16x128xbf16, #tpu.memory_space<vmem>>, vector<16x128xbf16>
    %4 = arith.index_cast %c0_i32 : i32 to index
    %c0_5 = arith.constant 0 : index
    %c0_6 = arith.constant 0 : index
    %5 = vector.load %arg2[%4, %c0_5, %c0_6] : memref<2x128x128xbf16, #tpu.memory_space<vmem>>, vector<1x128x128xbf16>
    %6 = vector.shape_cast %5 : vector<1x128x128xbf16> to vector<128x128xbf16>
    %cst = arith.constant dense<0.000000e+00> : vector<16x128xf32>
    %7 = tpu.matmul %3, %6, %cst {dimension_numbers = #tpu.dot_dimension_numbers<[1], [0], [0], [1], [0, 0, 1, 1], [], []>} : vector<16x128xbf16>, vector<128x128xbf16>, vector<16x128xf32> -> vector<16x128xf32>
    %8 = arith.index_cast %c0_i32 : i32 to index
    %c0_7 = arith.constant 0 : index
    %c0_8 = arith.constant 0 : index
    %9 = vector.load %arg3[%8, %c0_7, %c0_8] : memref<2x1x128xf32, #tpu.memory_space<vmem>>, vector<1x1x128xf32>
    %10 = vector.shape_cast %9 : vector<1x1x128xf32> to vector<1x128xf32>
    %11 = vector.broadcast %10 : vector<1x128xf32> to vector<16x128xf32>
    %12 = arith.addf %7, %11 : vector<16x128xf32>
    %13 = arith.truncf %12 : vector<16x128xf32> to vector<16x128xbf16>
    %c0_9 = arith.constant 0 : index
    %c0_10 = arith.constant 0 : index
    %14 = vector.load %arg7[%c0_9, %c0_10] : memref<16x128xbf16, #tpu.memory_space<vmem>>, vector<16x128xbf16>
    tpu.vector_store %arg7[%c0_9, %c0_10], %13 {strides = array<i32>} : memref<16x128xbf16, #tpu.memory_space<vmem>>, vector<16x128xbf16>,
    %c1_i32 = arith.constant 1 : i32
    %c0_11 = arith.constant 0 : index
    %c0_12 = arith.constant 0 : index
    %15 = vector.load %arg7[%c0_11, %c0_12] : memref<16x128xbf16, #tpu.memory_space<vmem>>, vector<16x128xbf16>
    %c1 = arith.constant 1 : index
    %c0_13 = arith.constant 0 : index
    %c0_14 = arith.constant 0 : index
    %16 = vector.load %arg2[%c1, %c0_13, %c0_14] : memref<2x128x128xbf16, #tpu.memory_space<vmem>>, vector<1x128x128xbf16>
    %17 = vector.shape_cast %16 : vector<1x128x128xbf16> to vector<128x128xbf16>
    %cst_15 = arith.constant dense<0.000000e+00> : vector<16x128xf32>
    %18 = tpu.matmul %15, %17, %cst_15 {dimension_numbers = #tpu.dot_dimension_numbers<[1], [0], [0], [1], [0, 0, 1, 1], [], []>} : vector<16x128xbf16>, vector<128x128xbf16>, vector<16x128xf32> -> vector<16x128xf32>
    %c1_16 = arith.constant 1 : index
    %c0_17 = arith.constant 0 : index
    %c0_18 = arith.constant 0 : index
    %19 = vector.load %arg3[%c1_16, %c0_17, %c0_18] : memref<2x1x128xf32, #tpu.memory_space<vmem>>, vector<1x1x128xf32>
    %20 = vector.shape_cast %19 : vector<1x1x128xf32> to vector<1x128xf32>
    %21 = vector.broadcast %20 : vector<1x128xf32> to vector<16x128xf32>
    %22 = arith.addf %18, %21 : vector<16x128xf32>
    %cst_19 = arith.constant dense<0.000000e+00> : vector<16xf32>
    %23 = vector.multi_reduction <add>, %22, %cst_19 [1] : vector<16x128xf32> to vector<16xf32>
    %24 = vector.shape_cast %23 : vector<16xf32> to vector<16x1xf32>
    %cst_20 = arith.constant 1.280000e+02 : f32
    %25 = vector.broadcast %cst_20 : f32 to vector<16x1xf32>
    %26 = arith.divf %24, %25 : vector<16x1xf32>
    %27 = vector.broadcast %26 : vector<16x1xf32> to vector<16x128xf32>
    %28 = arith.subf %22, %27 : vector<16x128xf32>
    %29 = arith.mulf %28, %28 : vector<16x128xf32>
    %cst_21 = arith.constant dense<0.000000e+00> : vector<16xf32>
    %30 = vector.multi_reduction <add>, %29, %cst_21 [1] : vector<16x128xf32> to vector<16xf32>
    %31 = vector.shape_cast %30 : vector<16xf32> to vector<16x1xf32>
    %cst_22 = arith.constant 1.270000e+02 : f32
    %32 = vector.broadcast %cst_22 : f32 to vector<16x1xf32>
    %33 = arith.divf %31, %32 : vector<16x1xf32>
    %34 = math.sqrt %33 : vector<16x1xf32>
    %cst_23 = arith.constant 9.99999997E-7 : f32
    %35 = vector.broadcast %cst_23 : f32 to vector<16x1xf32>
    %36 = arith.addf %34, %35 : vector<16x1xf32>
    %37 = tpu.reciprocal %36 : vector<16x1xf32> -> vector<16x1xf32>
    %c0_24 = arith.constant 0 : index
    %c0_25 = arith.constant 0 : index
    %38 = vector.load %arg4[%c0_24, %c0_25] : memref<1x128xf32, #tpu.memory_space<vmem>>, vector<1x128xf32>
    %39 = vector.broadcast %37 : vector<16x1xf32> to vector<16x128xf32>
    %40 = arith.mulf %28, %39 : vector<16x128xf32>
    %41 = vector.broadcast %38 : vector<1x128xf32> to vector<16x128xf32>
    %42 = arith.mulf %41, %40 : vector<16x128xf32>
    %c0_26 = arith.constant 0 : index
    %c0_27 = arith.constant 0 : index
    %43 = vector.load %arg5[%c0_26, %c0_27] : memref<1x128xf32, #tpu.memory_space<vmem>>, vector<1x128xf32>
    %44 = vector.broadcast %43 : vector<1x128xf32> to vector<16x128xf32>
    %45 = arith.addf %42, %44 : vector<16x128xf32>
    %c0_28 = arith.constant 0 : index
    %c0_29 = arith.constant 0 : index
    %46 = vector.load %arg6[%c0_28, %c0_29] : memref<16x128xf32, #tpu.memory_space<vmem>>, vector<16x128xf32>
    tpu.vector_store %arg6[%c0_28, %c0_29], %45 {strides = array<i32>} : memref<16x128xf32, #tpu.memory_space<vmem>>, vector<16x128xf32>,
    return
  }
  func.func @transform_0(%arg0: i32) -> (i32, i32) {
    %c0_i32 = arith.constant 0 : i32
    %c0_i32_0 = arith.constant 0 : i32
    return %arg0, %c0_i32 : i32, i32
  }
  func.func @transform_1(%arg0: i32) -> (i32, i32, i32) {
    %c0_i32 = arith.constant 0 : i32
    %c0_i32_0 = arith.constant 0 : i32
    %c0_i32_1 = arith.constant 0 : i32
    %c0_i32_2 = arith.constant 0 : i32
    return %c0_i32, %c0_i32_0, %c0_i32_1 : i32, i32, i32
  }
  func.func @transform_2(%arg0: i32) -> (i32, i32, i32) {
    %c0_i32 = arith.constant 0 : i32
    %c0_i32_0 = arith.constant 0 : i32
    %c0_i32_1 = arith.constant 0 : i32
    %c0_i32_2 = arith.constant 0 : i32
    return %c0_i32, %c0_i32_0, %c0_i32_1 : i32, i32, i32
  }
  func.func @transform_3(%arg0: i32) -> (i32, i32) {
    %c0_i32 = arith.constant 0 : i32
    %c0_i32_0 = arith.constant 0 : i32
    %c0_i32_1 = arith.constant 0 : i32
    return %c0_i32, %c0_i32_0 : i32, i32
  }
  func.func @transform_4(%arg0: i32) -> (i32, i32) {
    %c0_i32 = arith.constant 0 : i32
    %c0_i32_0 = arith.constant 0 : i32
    %c0_i32_1 = arith.constant 0 : i32
    return %c0_i32, %c0_i32_0 : i32, i32
  }
  func.func @transform_5(%arg0: i32) -> (i32, i32) {
    %c0_i32 = arith.constant 0 : i32
    %c0_i32_0 = arith.constant 0 : i32
    return %arg0, %c0_i32 : i32, i32
  }
}

</mosaic_0001>

<bundles_post_ra>
// kernel: tpu_custom_call.1
= control target key start
LH: loop header
LB: loop body
LE: loop exit
PB: predicated region body
PF: predicated region fallthrough
CT: control target
= control target key end

     0   :  { %10 = vsyncpa [#allocation4], 0  ;;  %s686_s0 = inlined_call_operand.hbm [shape: f32[16,128], index: 0, kind: input, shape index: {}]   ;;  %s687_s1 = inlined_call_operand.hbm [shape: bf16[2,128,128], index: 1, kind: input, shape index: {}]   ;;  %s688_s2 = inlined_call_operand.hbm [shape: f32[2,1,128], index: 2, kind: input, shape index: {}]   ;;  %s689_s3 = inlined_call_operand.vmem [shape: f32[1,128], index: 3, kind: input, shape index: {}]   ;;  %s690_s4 = inlined_call_operand.vmem [shape: f32[1,128], index: 4, kind: input, shape index: {}]   ;;  %s691_s5 = inlined_call_operand.hbm [shape: f32[16,128], index: 5, kind: output, shape index: {}]  }
   0x1   :  { %11 = vsyncpa [#allocation7], 0  ;;  %s30_s20 = sshll.u32 %s687_s1, 4  ;;  %s31_s20 = int_to_ptr.hbm [resolvable:$true] %s30_s20 }
   0x2   :  { %12 = vsyncpa [#allocation5], 0  ;;  %s610_s21 = smov [#allocation6]   ;;  %s17_s25 = sshll.u32 %s686_s0, 4  ;;  %s18_s25 = int_to_ptr.hbm [resolvable:$true] %s17_s25 }
   0x3   :  { %s32_s22 = sshll.u32 %s610_s21, 4  ;;  %s611_s26 = smov 64   ;;  %s33_s22 = int_to_ptr.vmem [resolvable:$true] %s32_s22 }
   0x4   :  { %s612_s27 = smov 4   ;;  %s613_s28 = smov [#allocation3]  }
   0x5   :  { %38 = dma.hbm_to_vmem [thread:$0]  %s31_s20, 2048, %s33_s22, [#allocation7], %s611_s26, %s611_s26, %s612_s27  }
   0x6   :  { %s19_s29 = sshll.u32 %s613_s28, 4  ;;  %s614_s30 = smov 128   ;;  %s20_s29 = int_to_ptr.vmem [resolvable:$true] %s19_s29 }
   0x7   :  { %s615_s6 = smov 8   ;;  %s43_s8 = sshll.u32 %s688_s2, 4  ;;  %s44_s8 = int_to_ptr.hbm [resolvable:$true] %s43_s8 }
   0x8   :  { %25 = dma.hbm_to_vmem [thread:$0]  %s18_s25, 256, %s20_s29, [#allocation4], %s614_s30, %s614_s30, %s615_s6  }
   0x9   :  { %s616_s9 = smov [#allocation8]   ;;  %s617_s10 = smov 16  }
   0xa   :  { %s45_s0 = sshll.u32 %s616_s9, 4  ;;  %s618_s11 = smov 1   ;;  %s46_s0 = int_to_ptr.vmem [resolvable:$true] %s45_s0 }
   0xb   :  { %51 = dma.hbm_to_vmem [thread:$0]  %s44_s8, 32, %s46_s0, [#allocation7], %s617_s10, %s617_s10, %s618_s11  }
   0xc   :  { %604 = dma.done.wait [#allocation4], 256  }
   0xd   :  { %605 = vsyncadd [#allocation4], 4294967040 }
   0xe   :  { %606 = dma.done.wait [#allocation7], 2080  }
   0xf   :  { %607 = vsyncadd [#allocation7], 4294965216  ;;  %v460_v0 = vld [vmem:[#allocation6 + $0x38] sm:$0xff]  ;;  %v459_v1 = vld [vmem:[#allocation6 + $0x30] sm:$0xff]  ;;  %v619_v32 = vmov 128.0   ;;  %v620_v47 = vmov 127.0  }
  0x10   :  { %150 = vmatpush.bf16.msra.mxu0 %v460_v0  ;;  %v68_v2 = vld [vmem:[#allocation3] sm:$0xff]  ;;  %v69_v3 = vld [vmem:[#allocation3 + $0x8] sm:$0xff]  ;;  %v458_v7 = vld [vmem:[#allocation6 + $0x28] sm:$0xff]  ;;  %496 = vrcp.f32 %v619_v32  ;;  %s366_s17 = sshll.u32 %s691_s5, 4  ;;  %s367_s17 = int_to_ptr.hbm [resolvable:$true] %s366_s17 }
  0x11   :  { %v469_v4 = vld [vmem:[#allocation6 + $0x78] sm:$0xff]  ;;  %v473_v5 = vpack.c.bf16 %v69_v3, %v68_v2  ;;  %v468_v6 = vld [vmem:[#allocation6 + $0x70] sm:$0xff]  ;;  %v457_v8 = vld [vmem:[#allocation6 + $0x20] sm:$0xff]  ;;  %498 = vrcp.f32 %v620_v47 }
  0x12   :  { %246 = vmatpush.bf16.msra.mxu1 %v469_v4  ;;  %v456_v9 = vld [vmem:[#allocation6 + $0x18] sm:$0xff]  ;;  %v455_v10 = vld [vmem:[#allocation6 + $0x10] sm:$0xff]  ;;  %v454_v11 = vld [vmem:[#allocation6 + $0x8] sm:$0xff] }
  0x13   :  { %474 = vst [vmem:[#allocation2] sm:$0xff] %v473_v5   ;;  %v453_v12 = vld [vmem:[#allocation6] sm:$0xff]  ;;  %v467_v14 = vld [vmem:[#allocation6 + $0x68] sm:$0xff]  ;;  %v465_v16 = vld [vmem:[#allocation6 + $0x58] sm:$0xff] }
  0x14   :  { %151 = vmatpush.bf16.msra.mxu0 %v459_v1  ;;  %v466_v15 = vld [vmem:[#allocation6 + $0x60] sm:$0xff]  ;;  %v464_v17 = vld [vmem:[#allocation6 + $0x50] sm:$0xff]  ;;  %v463_v18 = vld [vmem:[#allocation6 + $0x48] sm:$0xff] }
  0x15   :  { %v462_v19 = vld [vmem:[#allocation6 + $0x40] sm:$0xff] }
  0x16   :  { %247 = vmatpush.bf16.msra.mxu1 %v468_v6  ;;  %v492_v21 = vld [vmem:[#allocation8] ss:$0 sm:$0xff]  ;;  %v493_v27 = vld [vmem:[#allocation8 + $0x1] ss:$0 sm:$0xff]  ;;  %v497_v33 = vpop.eup %496 }
  0x17   :  { %v265_v34 = vmul.f32 128.0, %v497_v33  ;;  %vm269_vm0 = vweird.f32 %v497_v33  ;;  %v499_v48 = vpop.eup %498 }
  0x18   :  { %152 = vmatpush.bf16.msra.mxu0 %v458_v7  ;;  %v282_v49 = vmul.f32 127.0, %v499_v48  ;;  %vm286_vm1 = vweird.f32 %v499_v48 }
  0x19   :  { %v266_v35 = vsub.f32 1.0, %v265_v34 }
  0x1a   :  { %v452_v13 = vld [vmem:[#allocation2] sm:$0xff]  ;;  %248 = vmatpush.bf16.msra.mxu1 %v467_v14  ;;  %v283_v50 = vsub.f32 1.0, %v282_v49 }
  0x1b   :  { %v267_v36 = vmul.f32 %v497_v33, %v266_v35 }
  0x1c   :  { %153 = vmatpush.bf16.msra.mxu0 %v457_v8  ;;  %v284_v51 = vmul.f32 %v499_v48, %v283_v50 }
  0x1d   :  { %v268_v37 = vadd.f32 %v497_v33, %v267_v36 }
  0x1e   :  { %249 = vmatpush.bf16.msra.mxu1 %v466_v15  ;;  %v285_v52 = vadd.f32 %v499_v48, %v284_v51 }
  0x1f   :  { %v270_v38 = vsel %vm269_vm0, %v497_v33, %v268_v37 }
  0x20   :  { %154 = vmatpush.bf16.msra.mxu0 %v456_v9  ;;  %v287_v53 = vsel %vm286_vm1, %v499_v48, %v285_v52 }
  0x22   :  { %250 = vmatpush.bf16.msra.mxu1 %v465_v16 }
  0x24   :  { %155 = vmatpush.bf16.msra.mxu0 %v455_v10 }
  0x26   :  { %251 = vmatpush.bf16.msra.mxu1 %v464_v17 }
  0x28   :  { %156 = vmatpush.bf16.msra.mxu0 %v454_v11 }
  0x2a   :  { %252 = vmatpush.bf16.msra.mxu1 %v463_v18 }
  0x2c   :  { %157 = vmatpush.bf16.msra.mxu0 %v453_v12 }
  0x2e   :  { %253 = vmatpush.bf16.msra.mxu1 %v462_v19 }
  0x2f   :  { %158 = vmatmul.bf16.vlgmr.msra.gmra.mxu0 %v452_v13 }
  0xac   :  { %v159_v20 = vpop.f32.mrf.mxu0 }
  0xad   :  { %v160_v23 = vadd.f32 %v492_v21, %v159_v20 }
  0xb4   :  { %v161_v22 = vpop.f32.mrf.mxu0 }
  0xb5   :  { %v162_v24 = vadd.f32 %v492_v21, %v161_v22 }
  0xb7   :  { %v478_v25 = vpack.c.bf16 %v162_v24, %v160_v23 }
  0xb9   :  { %479 = vst [vmem:[#allocation2] sm:$0xff] %v478_v25  }
  0xc0   :  { %v461_v26 = vld [vmem:[#allocation2] sm:$0xff] }
  0xc1   :  { %254 = vmatmul.bf16.vlgmr.msra.gmra.mxu1 %v461_v26 }
 0x13e   :  { %v255_v28 = vpop.f32.mrf.mxu1 }
 0x13f   :  { %v256_v29 = vadd.f32 %v493_v27, %v255_v28 }
 0x141   :  { %260 = vadd.xlane.f32.xlu0 %v256_v29 }
 0x146   :  { %v257_v30 = vpop.f32.mrf.mxu1 }
 0x147   :  { %v258_v31 = vadd.f32 %v493_v27, %v257_v30  ;;  %v494_v27 = vld [vmem:[%s689_s3] ss:$0 sm:$0xff]  ;;  %s621_s3 = smov [#allocation9]  }
 0x148   :  { %s364_s15 = sshll.u32 %s621_s3, 4  ;;  %s365_s15 = int_to_ptr.vmem [resolvable:$true] %s364_s15 }
 0x149   :  { %262 = vadd.xlane.f32.xlu0 %v258_v31 }
 0x1b4   :  { %v261_v39 = vpop.xlane.xlu0 %260 }
 0x1b5   :  { %v271_v40 = vmul.f32 %v270_v38, %v261_v39 }
 0x1b7   :  { %v664_v41 = vsub.f32 %v256_v29, %v271_v40 }
 0x1b9   :  { %v275_v42 = vmul.f32 %v664_v41, %v664_v41 }
 0x1bb   :  { %277 = vadd.xlane.f32.xlu1 %v275_v42 }
 0x1bc   :  { %v263_v43 = vpop.xlane.xlu0 %262 }
 0x1bd   :  { %v272_v44 = vmul.f32 %v270_v38, %v263_v43 }
 0x1bf   :  { %v668_v45 = vsub.f32 %v258_v31, %v272_v44  ;;  %v495_v31 = vld [vmem:[%s690_s4] ss:$0 sm:$0xff] }
 0x1c1   :  { %v276_v46 = vmul.f32 %v668_v45, %v668_v45 }
 0x1c3   :  { %279 = vadd.xlane.f32.xlu1 %v276_v46 }
 0x22e   :  { %v278_v54 = vpop.xlane.xlu1 %277 }
 0x22f   :  { %v288_v55 = vmul.f32 %v287_v53, %v278_v54 }
 0x231   :  { %500 = vrsqrt.f32 %v288_v55  ;;  %vm297_vm2 = vcmp.eq.f32.partialorder %v288_v55, inf  ;;  %v300_v4 = vand.u32 2147483648, %v288_v55  ;;  %vm299_vm3 = vcmp.eq.f32.partialorder %v288_v55, 0.0 }
 0x236   :  { %v280_v56 = vpop.xlane.xlu1 %279 }
 0x237   :  { %v501_v57 = vpop.eup %500  ;;  %v289_v58 = vmul.f32 %v287_v53, %v280_v56 }
 0x238   :  { %v291_v59 = vmul.f32 %v501_v57, %v288_v55 }
 0x239   :  { %502 = vrsqrt.f32 %v289_v58  ;;  %vm309_vm4 = vcmp.eq.f32.partialorder %v289_v58, inf  ;;  %v312_v12 = vand.u32 2147483648, %v289_v58  ;;  %vm311_vm5 = vcmp.eq.f32.partialorder %v289_v58, 0.0 }
 0x23a   :  { %v292_v60 = vmul.f32 %v501_v57, %v291_v59 }
 0x23c   :  { %v293_v61 = vmul.f32 0.5, %v292_v60 }
 0x23e   :  { %v294_v62 = vsub.f32 1.5, %v293_v61 }
 0x23f   :  { %v503_v63 = vpop.eup %502 }
 0x240   :  { %v295_v0 = vmul.f32 %v501_v57, %v294_v62  ;;  %v303_v1 = vmul.f32 %v503_v63, %v289_v58 }
 0x242   :  { %v296_v2 = vmul.f32 %v295_v0, %v288_v55  ;;  %v304_v3 = vmul.f32 %v503_v63, %v303_v1 }
 0x244   :  { %v298_v5 = vsel %vm297_vm2, %v288_v55, %v296_v2  ;;  %v305_v6 = vmul.f32 0.5, %v304_v3 }
 0x245   :  { %v301_v7 = vsel %vm299_vm3, %v300_v4, %v298_v5 }
 0x246   :  { %v314_v8 = vadd.f32 1e-06, %v301_v7  ;;  %v306_v9 = vsub.f32 1.5, %v305_v6 }
 0x248   :  { %504 = vrcp.f32 %v314_v8  ;;  %v307_v10 = vmul.f32 %v503_v63, %v306_v9  ;;  %v327_v19 = vand.u32 2147483648, %v314_v8  ;;  %v325_v21 = vand.u32 2147483647, %v314_v8 }
 0x249   :  { %vm321_vm7 = vweird.f32 %v314_v8 }
 0x24a   :  { %v308_v11 = vmul.f32 %v307_v10, %v289_v58  ;;  %v328_v24 = vor.u32 1.1754944e-38, %v327_v19  ;;  %vm326_vm9 = vcmp.eq.f32.partialorder %v325_v21, 8.507059e+37 }
 0x24c   :  { %v310_v13 = vsel %vm309_vm4, %v289_v58, %v308_v11 }
 0x24d   :  { %v313_v14 = vsel %vm311_vm5, %v312_v12, %v310_v13 }
 0x24e   :  { %v505_v15 = vpop.eup %504  ;;  %v315_v16 = vadd.f32 1e-06, %v313_v14 }
 0x24f   :  { %v317_v17 = vmul.f32 %v505_v15, %v314_v8  ;;  %vm322_vm6 = vweird.f32 %v505_v15 }
 0x250   :  { %506 = vrcp.f32 %v315_v16  ;;  %vm323_vm8 = vmor %vm321_vm7, %vm322_vm6  ;;  %v341_v32 = vand.u32 2147483648, %v315_v16  ;;  %v339_v34 = vand.u32 2147483647, %v315_v16  ;;  %vm335_vm11 = vweird.f32 %v315_v16 }
 0x251   :  { %v318_v18 = vsub.f32 1.0, %v317_v17 }
 0x252   :  { %v342_v38 = vor.u32 1.1754944e-38, %v341_v32  ;;  %vm340_vm13 = vcmp.eq.f32.partialorder %v339_v34, 8.507059e+37 }
 0x253   :  { %v319_v20 = vmul.f32 %v505_v15, %v318_v18 }
 0x255   :  { %v320_v22 = vadd.f32 %v505_v15, %v319_v20 }
 0x256   :  { %v507_v23 = vpop.eup %506 }
 0x257   :  { %v324_v25 = vsel %vm323_vm8, %v505_v15, %v320_v22  ;;  %v331_v26 = vmul.f32 %v507_v23, %v315_v16  ;;  %vm336_vm10 = vweird.f32 %v507_v23 }
 0x258   :  { %v329_v28 = vsel %vm326_vm9, %v328_v24, %v324_v25  ;;  %vm337_vm12 = vmor %vm335_vm11, %vm336_vm10 }
 0x259   :  { %v332_v29 = vsub.f32 1.0, %v331_v26  ;;  %v345_v30 = vmul.f32 %v329_v28, %v664_v41 }
 0x25b   :  { %v333_v33 = vmul.f32 %v507_v23, %v332_v29  ;;  %v350_v35 = vmul.f32 %v494_v27, %v345_v30 }
 0x25d   :  { %v334_v36 = vadd.f32 %v507_v23, %v333_v33  ;;  %v356_v37 = vadd.f32 %v495_v31, %v350_v35 }
 0x25f   :  { %v338_v39 = vsel %vm337_vm12, %v507_v23, %v334_v36  ;;  %358 = vst [vmem:[#allocation9] sm:$0xff] %v356_v37 }
 0x260   :  { %v343_v40 = vsel %vm340_vm13, %v342_v38, %v338_v39 }
 0x261   :  { %v346_v41 = vmul.f32 %v343_v40, %v668_v45 }
 0x263   :  { %v351_v42 = vmul.f32 %v494_v27, %v346_v41 }
 0x265   :  { %v357_v43 = vadd.f32 %v495_v31, %v351_v42 }
 0x267   :  { %359 = vst [vmem:[#allocation9 + $0x8] sm:$0xff] %v357_v43 }
 0x268   :  { %372 = dma.vmem_to_hbm [thread:$0]  %s365_s15, 256, %s367_s17, [#allocation5], %s614_s30, %s614_s30, %s615_s6  }
 0x269   :  { %608 = dma.done.wait [#allocation5], 256  }
 0x26a   :  { %609 = vsyncadd [#allocation5], 4294967040 }
 0x26b   :  { %377 = vsyncpa [#allocation4], 1 }
 0x26c   :  { %378 = vsyncpa [#allocation7], 1 }
 0x26d   :  { %379 = vsyncpa [#allocation5], 1 }

</bundles_post_ra>
